<compile_context>
chip_gen: v5e
topology: v5e:2x2
jax: 0.10.0
libtpu: 0.0.40
codegen_flags: <defaults>
</compile_context>

<pallas_src>
import functools

import jax
import jax.numpy as jnp
from jax.experimental import pallas as pl
from jax.experimental.pallas import tpu as pltpu


def _round_up(x, m):
    return -(-x // m) * m


# ---------------------------------------------------------------------------
# Kernel: one batch tile of the full forward pass.
#   obs_ref  : (A, TB, D_obs)          agent-major batch tile
#   act_ref  : (TB, A*D_act)           agent-major flattened actions
#   out_ref  : (1, 1, TB)              lane-dense output row for this tile
#   slab_ref : (TB, A*128 + A*D_act)   VMEM concat slab (scratch)
# ---------------------------------------------------------------------------
def _critic_kernel(obs_ref, act_ref,
                   w1_ref, b1_ref,
                   w2_ref, b2_ref,
                   w3_ref, b3_ref,
                   w4_ref, b4_ref,
                   out_ref, slab_ref):
    A, TB, D_obs = obs_ref.shape
    H1 = w1_ref.shape[1]            # 128
    DA = act_ref.shape[1]           # A * D_act

    # --- FC1: all agents fused into one MXU pass: (A*TB, D_obs) @ (D_obs, 128)
    obs_flat = obs_ref[...].reshape(A * TB, D_obs)
    h1 = jnp.dot(obs_flat, w1_ref[...], preferred_element_type=jnp.float32)
    h1 = jnp.maximum(h1 + b1_ref[...], 0.0)                 # (A*TB, 128)

    # --- Scatter per-agent FC1 blocks + actions into the concat slab.  The
    #     column layout [h1_0 | ... | h1_{A-1} | act_0 | ... | act_{A-1}]
    #     matches the pre-permuted FC2 weight built in the wrapper.
    for a in range(A):
        slab_ref[:, a * H1:(a + 1) * H1] = h1[a * TB:(a + 1) * TB, :]
    slab_ref[:, A * H1:A * H1 + DA] = act_ref[...]

    # --- FC2: ONE K = A*(128 + D_act) contraction on the MXU.
    h2 = jnp.dot(slab_ref[...], w2_ref[...],
                 preferred_element_type=jnp.float32) + b2_ref[...]
    h2 = jnp.maximum(h2, 0.0)                                # (TB, 256)

    # --- FC3
    h3 = jnp.dot(h2, w3_ref[...],
                 preferred_element_type=jnp.float32) + b3_ref[...]
    h3 = jnp.maximum(h3, 0.0)                                # (TB, 128)

    # --- FC4 (out_features = 1): contract the hidden axis with the batch on
    #     the lane axis -> result is already lane-dense (1, TB).
    y = jax.lax.dot_general(
        w4_ref[...], h3, (((1,), (1,)), ((), ())),
        preferred_element_type=jnp.float32)                  # (1, TB)
    out_ref[...] = (y + b4_ref[...]).reshape(1, 1, TB)


# ---------------------------------------------------------------------------
# Wrapper: layout plumbing, batch tiling, pallas_call.
# ---------------------------------------------------------------------------
@functools.partial(jax.jit, static_argnames=("tile_b",))
def critic_forward(obs_n, act_n, params, tile_b=1024):
    B, A, D_obs = obs_n.shape
    D_act = act_n.shape[2]

    w1, b1 = params["w1"], params["b1"]
    w2, b2 = params["w2"], params["b2"]
    w3, b3 = params["w3"], params["b3"]
    w4, b4 = params["w4"], params["b4"]
    H1 = w1.shape[1]                     # 128
    H2 = w2.shape[1]                     # 256
    H3 = w3.shape[1]                     # 128
    K2 = A * (H1 + D_act)                # fused FC2 contraction size

    # ---- batch tiling ------------------------------------------------------
    # Big tiles amortize the ~0.35us per-grid-step overhead; when more than
    # one tile is needed, keep the tile count even so dimension_semantics
    # "parallel" keeps both v7x TensorCores busy.
    B8 = _round_up(B, 8)
    if B8 <= tile_b:
        TB, num_tiles = B8, 1
    else:
        TB = _round_up(min(tile_b, B8), 128)
        num_tiles = -(-B8 // TB)
        if num_tiles % 2 == 1:
            num_tiles += 1
            TB = _round_up(-(-B8 // num_tiles), 128)
    Bp = num_tiles * TB

    # ---- layout prep -------------------------------------------------------
    obs_t = jnp.transpose(obs_n, (1, 0, 2))                  # (A, B, D_obs)
    act2d = act_n.reshape(B, A * D_act)                      # agent-major flat
    if Bp != B:
        obs_t = jnp.pad(obs_t, ((0, 0), (0, Bp - B), (0, 0)))
        act2d = jnp.pad(act2d, ((0, Bp - B), (0, 0)))

    # Permute FC2 weight rows from the torch [h1_a | act_a]-per-agent order to
    # the kernel slab order [h1_0..h1_{A-1} | act_0..act_{A-1}].
    w2_r = w2.reshape(A, H1 + D_act, H2)
    w2_cat = jnp.concatenate(
        [w2_r[:, :H1, :].reshape(A * H1, H2),
         w2_r[:, H1:, :].reshape(A * D_act, H2)], axis=0)    # (K2, 256)

    def resident(shape):
        # Same block every grid step -> weight stays VMEM resident.
        return pl.BlockSpec(shape, lambda i, _n=len(shape): (0,) * _n)

    in_specs = [
        pl.BlockSpec((A, TB, D_obs), lambda i: (0, i, 0)),   # obs tile
        pl.BlockSpec((TB, A * D_act), lambda i: (i, 0)),     # act tile
        resident((D_obs, H1)), resident((1, H1)),            # W1, b1
        resident((K2, H2)), resident((1, H2)),               # W2 (fused), b2
        resident((H2, H3)), resident((1, H3)),               # W3, b3
        resident((1, H3)), resident((1, 1)),                 # W4 row, b4
    ]
    out_spec = pl.BlockSpec((1, 1, TB), lambda i: (i, 0, 0))

    weight_bytes = 4 * (w1.size + b1.size + w2.size + b2.size
                        + w3.size + b3.size + w4.size + b4.size)
    stream_bytes = 4 * (obs_t.size + act2d.size + Bp)
    flops = 2 * Bp * (A * D_obs * H1 + K2 * H2 + H2 * H3 + H3)
    cost = pl.CostEstimate(flops=int(flops), transcendentals=0,
                           bytes_accessed=int(stream_bytes + weight_bytes))

    out = pl.pallas_call(
        _critic_kernel,
        out_shape=jax.ShapeDtypeStruct((num_tiles, 1, TB), jnp.float32),
        grid=(num_tiles,),
        in_specs=in_specs,
        out_specs=out_spec,
        scratch_shapes=[pltpu.VMEM((TB, K2), jnp.float32)],  # concat slab
        compiler_params=pltpu.CompilerParams(
            dimension_semantics=("parallel",),
            vmem_limit_bytes=48 * 1024 * 1024),
        cost_estimate=cost,
    )(obs_t, act2d,
      w1, b1.reshape(1, -1),
      w2_cat, b2.reshape(1, -1),
      w3, b3.reshape(1, -1),
      w4.reshape(1, H3), b4.reshape(1, 1))

    return out.reshape(Bp, 1)[:B]


# ---------------------------------------------------------------------------
# Deterministic parameter init (PyTorch-Linear-style uniform bounds).
# Weights stored as (in_features, out_features): y = x @ W + b.
# ---------------------------------------------------------------------------
def init_params(key, n_agent, dim_obs, dim_act):
    def linear(key, fan_in, fan_out):
        kw, kb = jax.random.split(key)
        bound = 1.0 / jnp.sqrt(jnp.float32(fan_in))
        w = jax.random.uniform(kw, (fan_in, fan_out), jnp.float32, -bound, bound)
        b = jax.random.uniform(kb, (fan_out,), jnp.float32, -bound, bound)
        return w, b

    k1, k2, k3, k4 = jax.random.split(key, 4)
    w1, b1 = linear(k1, dim_obs, 128)
    w2, b2 = linear(k2, (128 + dim_act) * n_agent, 256)
    w3, b3 = linear(k3, 256, 128)
    w4, b4 = linear(k4, 128, 1)
    return dict(w1=w1, b1=b1, w2=w2, b2=b2, w3=w3, b3=b3, w4=w4, b4=b4)


# Pure-JAX reference (mirrors the torch forward literally: concat + flatten).
def critic_reference(obs_n, act_n, params):
    B = obs_n.shape[0]
    h1 = jax.nn.relu(obs_n @ params["w1"] + params["b1"])
    f = jnp.concatenate([h1, act_n], axis=2).reshape(B, -1)
    h2 = jax.nn.relu(f @ params["w2"] + params["b2"])
    h3 = jax.nn.relu(h2 @ params["w3"] + params["b3"])
    return h3 @ params["w4"] + params["b4"]


if __name__ == "__main__":
    batch, n_agent, dim_obs, dim_act = 2, 3, 16, 4

    key = jax.random.PRNGKey(0)
    k_obs, k_act, k_par, k_obs2, k_act2 = jax.random.split(key, 5)

    obs_n = jax.random.normal(k_obs, (batch, n_agent, dim_obs), jnp.float32)
    act_n = jax.random.normal(k_act, (batch, n_agent, dim_act), jnp.float32)
    params = init_params(k_par, n_agent, dim_obs, dim_act)

    out = jax.block_until_ready(critic_forward(obs_n, act_n, params))
    ref = critic_reference(obs_n, act_n, params)
    assert out.shape == (batch, 1)
    assert jnp.allclose(out, ref, atol=1e-4, rtol=1e-4)

    # Exercise the multi-tile path (even grid count + batch padding).
    B2 = 300
    obs2 = jax.random.normal(k_obs2, (B2, n_agent, dim_obs), jnp.float32)
    act2 = jax.random.normal(k_act2, (B2, n_agent, dim_act), jnp.float32)
    out2 = jax.block_until_ready(critic_forward(obs2, act2, params, tile_b=128))
    ref2 = critic_reference(obs2, act2, params)
    assert out2.shape == (B2, 1)
    assert jnp.allclose(out2, ref2, atol=1e-4, rtol=1e-4)

    print("KERNEL_OK")
</pallas_src>

<mosaic_0001>
module attributes {stable_mosaic.version = 11 : i64} {
  func.func @_critic_kernel(%arg0: i32, %arg1: memref<3x8x16xf32, #tpu.memory_space<vmem>>, %arg2: memref<8x12xf32, #tpu.memory_space<vmem>>, %arg3: memref<16x128xf32, #tpu.memory_space<vmem>>, %arg4: memref<1x128xf32, #tpu.memory_space<vmem>>, %arg5: memref<396x256xf32, #tpu.memory_space<vmem>>, %arg6: memref<1x256xf32, #tpu.memory_space<vmem>>, %arg7: memref<256x128xf32, #tpu.memory_space<vmem>>, %arg8: memref<1x128xf32, #tpu.memory_space<vmem>>, %arg9: memref<1x128xf32, #tpu.memory_space<vmem>>, %arg10: memref<1x1xf32, #tpu.memory_space<vmem>>, %arg11: memref<1x1x8xf32, #tpu.memory_space<vmem>>, %arg12: memref<8x396xf32, #tpu.memory_space<vmem>>) attributes {dimension_semantics = [#tpu.dimension_semantics<parallel>], iteration_bounds = array<i64: 1>, scalar_prefetch = 0 : i64, scratch_operands = 1 : i64, tpu.core_type = #tpu.core_type<tc>, window_params = [{transform_indices = @transform_0, window_bounds = array<i64: 3, 8, 16>}, {transform_indices = @transform_1, window_bounds = array<i64: 8, 12>}, {pipeline_mode = #tpu.pipeline_mode<synchronous>, transform_indices = @transform_2, window_bounds = array<i64: 16, 128>}, {pipeline_mode = #tpu.pipeline_mode<synchronous>, transform_indices = @transform_3, window_bounds = array<i64: 1, 128>}, {pipeline_mode = #tpu.pipeline_mode<synchronous>, transform_indices = @transform_4, window_bounds = array<i64: 396, 256>}, {pipeline_mode = #tpu.pipeline_mode<synchronous>, transform_indices = @transform_5, window_bounds = array<i64: 1, 256>}, {pipeline_mode = #tpu.pipeline_mode<synchronous>, transform_indices = @transform_6, window_bounds = array<i64: 256, 128>}, {pipeline_mode = #tpu.pipeline_mode<synchronous>, transform_indices = @transform_7, window_bounds = array<i64: 1, 128>}, {pipeline_mode = #tpu.pipeline_mode<synchronous>, transform_indices = @transform_8, window_bounds = array<i64: 1, 128>}, {pipeline_mode = #tpu.pipeline_mode<synchronous>, transform_indices = @transform_9, window_bounds = array<i64: 1, 1>}, {transform_indices = @transform_10, window_bounds = array<i64: 1, 1, 8>}]} {
    %c0 = arith.constant 0 : index
    %c0_0 = arith.constant 0 : index
    %c0_1 = arith.constant 0 : index
    %0 = vector.load %arg1[%c0, %c0_0, %c0_1] : memref<3x8x16xf32, #tpu.memory_space<vmem>>, vector<3x8x16xf32>
    %1 = vector.shape_cast %0 : vector<3x8x16xf32> to vector<24x16xf32>
    %c0_2 = arith.constant 0 : index
    %c0_3 = arith.constant 0 : index
    %2 = vector.load %arg3[%c0_2, %c0_3] : memref<16x128xf32, #tpu.memory_space<vmem>>, vector<16x128xf32>
    %cst = arith.constant dense<0.000000e+00> : vector<24x128xf32>
    %3 = tpu.matmul %1, %2, %cst {dimension_numbers = #tpu.dot_dimension_numbers<[1], [0], [0], [1], [0, 0, 1, 1], [], []>} : vector<24x16xf32>, vector<16x128xf32>, vector<24x128xf32> -> vector<24x128xf32>
    %c0_4 = arith.constant 0 : index
    %c0_5 = arith.constant 0 : index
    %4 = vector.load %arg4[%c0_4, %c0_5] : memref<1x128xf32, #tpu.memory_space<vmem>>, vector<1x128xf32>
    %5 = vector.broadcast %4 : vector<1x128xf32> to vector<24x128xf32>
    %6 = arith.addf %3, %5 : vector<24x128xf32>
    %cst_6 = arith.constant 0.000000e+00 : f32
    %7 = vector.broadcast %cst_6 : f32 to vector<24x128xf32>
    %8 = arith.maximumf %6, %7 : vector<24x128xf32>
    %9 = vector.extract_strided_slice %8 {offsets = [0, 0], sizes = [8, 128], strides = [1, 1]} : vector<24x128xf32> to vector<8x128xf32>
    %c0_7 = arith.constant 0 : index
    %c0_8 = arith.constant 0 : index
    %10 = vector.load %arg12[%c0_7, %c0_8] : memref<8x396xf32, #tpu.memory_space<vmem>>, vector<8x128xf32>
    tpu.vector_store %arg12[%c0_7, %c0_8], %9 {strides = array<i32>} : memref<8x396xf32, #tpu.memory_space<vmem>>, vector<8x128xf32>,
    %11 = vector.extract_strided_slice %8 {offsets = [8, 0], sizes = [8, 128], strides = [1, 1]} : vector<24x128xf32> to vector<8x128xf32>
    %c0_9 = arith.constant 0 : index
    %c128 = arith.constant 128 : index
    %12 = vector.load %arg12[%c0_9, %c128] : memref<8x396xf32, #tpu.memory_space<vmem>>, vector<8x128xf32>
    tpu.vector_store %arg12[%c0_9, %c128], %11 {strides = array<i32>} : memref<8x396xf32, #tpu.memory_space<vmem>>, vector<8x128xf32>,
    %13 = vector.extract_strided_slice %8 {offsets = [16, 0], sizes = [8, 128], strides = [1, 1]} : vector<24x128xf32> to vector<8x128xf32>
    %c0_10 = arith.constant 0 : index
    %c256 = arith.constant 256 : index
    %14 = vector.load %arg12[%c0_10, %c256] : memref<8x396xf32, #tpu.memory_space<vmem>>, vector<8x128xf32>
    tpu.vector_store %arg12[%c0_10, %c256], %13 {strides = array<i32>} : memref<8x396xf32, #tpu.memory_space<vmem>>, vector<8x128xf32>,
    %c0_11 = arith.constant 0 : index
    %c0_12 = arith.constant 0 : index
    %15 = vector.load %arg2[%c0_11, %c0_12] : memref<8x12xf32, #tpu.memory_space<vmem>>, vector<8x12xf32>
    %c0_13 = arith.constant 0 : index
    %c384 = arith.constant 384 : index
    %16 = vector.load %arg12[%c0_13, %c384] : memref<8x396xf32, #tpu.memory_space<vmem>>, vector<8x12xf32>
    tpu.vector_store %arg12[%c0_13, %c384], %15 {strides = array<i32>} : memref<8x396xf32, #tpu.memory_space<vmem>>, vector<8x12xf32>,
    %c0_14 = arith.constant 0 : index
    %c0_15 = arith.constant 0 : index
    %17 = vector.load %arg12[%c0_14, %c0_15] : memref<8x396xf32, #tpu.memory_space<vmem>>, vector<8x396xf32>
    %c0_16 = arith.constant 0 : index
    %c0_17 = arith.constant 0 : index
    %18 = vector.load %arg5[%c0_16, %c0_17] : memref<396x256xf32, #tpu.memory_space<vmem>>, vector<396x256xf32>
    %cst_18 = arith.constant dense<0.000000e+00> : vector<8x256xf32>
    %19 = tpu.matmul %17, %18, %cst_18 {dimension_numbers = #tpu.dot_dimension_numbers<[1], [0], [0], [1], [0, 0, 1, 1], [], []>} : vector<8x396xf32>, vector<396x256xf32>, vector<8x256xf32> -> vector<8x256xf32>
    %c0_19 = arith.constant 0 : index
    %c0_20 = arith.constant 0 : index
    %20 = vector.load %arg6[%c0_19, %c0_20] : memref<1x256xf32, #tpu.memory_space<vmem>>, vector<1x256xf32>
    %21 = vector.broadcast %20 : vector<1x256xf32> to vector<8x256xf32>
    %22 = arith.addf %19, %21 : vector<8x256xf32>
    %cst_21 = arith.constant 0.000000e+00 : f32
    %23 = vector.broadcast %cst_21 : f32 to vector<8x256xf32>
    %24 = arith.maximumf %22, %23 : vector<8x256xf32>
    %c0_22 = arith.constant 0 : index
    %c0_23 = arith.constant 0 : index
    %25 = vector.load %arg7[%c0_22, %c0_23] : memref<256x128xf32, #tpu.memory_space<vmem>>, vector<256x128xf32>
    %cst_24 = arith.constant dense<0.000000e+00> : vector<8x128xf32>
    %26 = tpu.matmul %24, %25, %cst_24 {dimension_numbers = #tpu.dot_dimension_numbers<[1], [0], [0], [1], [0, 0, 1, 1], [], []>} : vector<8x256xf32>, vector<256x128xf32>, vector<8x128xf32> -> vector<8x128xf32>
    %c0_25 = arith.constant 0 : index
    %c0_26 = arith.constant 0 : index
    %27 = vector.load %arg8[%c0_25, %c0_26] : memref<1x128xf32, #tpu.memory_space<vmem>>, vector<1x128xf32>
    %28 = vector.broadcast %27 : vector<1x128xf32> to vector<8x128xf32>
    %29 = arith.addf %26, %28 : vector<8x128xf32>
    %cst_27 = arith.constant 0.000000e+00 : f32
    %30 = vector.broadcast %cst_27 : f32 to vector<8x128xf32>
    %31 = arith.maximumf %29, %30 : vector<8x128xf32>
    %c0_28 = arith.constant 0 : index
    %c0_29 = arith.constant 0 : index
    %32 = vector.load %arg9[%c0_28, %c0_29] : memref<1x128xf32, #tpu.memory_space<vmem>>, vector<1x128xf32>
    %cst_30 = arith.constant dense<0.000000e+00> : vector<1x8xf32>
    %33 = tpu.matmul %32, %31, %cst_30 {dimension_numbers = #tpu.dot_dimension_numbers<[1], [1], [0], [0], [0, 0, 1, 0], [], []>} : vector<1x128xf32>, vector<8x128xf32>, vector<1x8xf32> -> vector<1x8xf32>
    %c0_31 = arith.constant 0 : index
    %c0_32 = arith.constant 0 : index
    %34 = vector.load %arg10[%c0_31, %c0_32] : memref<1x1xf32, #tpu.memory_space<vmem>>, vector<1x1xf32>
    %35 = vector.broadcast %34 : vector<1x1xf32> to vector<1x8xf32>
    %36 = arith.addf %33, %35 : vector<1x8xf32>
    %37 = vector.shape_cast %36 : vector<1x8xf32> to vector<1x1x8xf32>
    %c0_33 = arith.constant 0 : index
    %c0_34 = arith.constant 0 : index
    %c0_35 = arith.constant 0 : index
    %38 = vector.load %arg11[%c0_33, %c0_34, %c0_35] : memref<1x1x8xf32, #tpu.memory_space<vmem>>, vector<1x1x8xf32>
    tpu.vector_store %arg11[%c0_33, %c0_34, %c0_35], %37 {strides = array<i32>} : memref<1x1x8xf32, #tpu.memory_space<vmem>>, vector<1x1x8xf32>,
    return
  }
  func.func @transform_0(%arg0: i32) -> (i32, i32, i32) {
    %c0_i32 = arith.constant 0 : i32
    %c0_i32_0 = arith.constant 0 : i32
    %c0_i32_1 = arith.constant 0 : i32
    return %c0_i32, %arg0, %c0_i32_0 : i32, i32, i32
  }
  func.func @transform_1(%arg0: i32) -> (i32, i32) {
    %c0_i32 = arith.constant 0 : i32
    %c0_i32_0 = arith.constant 0 : i32
    return %arg0, %c0_i32 : i32, i32
  }
  func.func @transform_2(%arg0: i32) -> (i32, i32) {
    %c0_i32 = arith.constant 0 : i32
    %c0_i32_0 = arith.constant 0 : i32
    %c0_i32_1 = arith.constant 0 : i32
    return %c0_i32, %c0_i32_0 : i32, i32
  }
  func.func @transform_3(%arg0: i32) -> (i32, i32) {
    %c0_i32 = arith.constant 0 : i32
    %c0_i32_0 = arith.constant 0 : i32
    %c0_i32_1 = arith.constant 0 : i32
    return %c0_i32, %c0_i32_0 : i32, i32
  }
  func.func @transform_4(%arg0: i32) -> (i32, i32) {
    %c0_i32 = arith.constant 0 : i32
    %c0_i32_0 = arith.constant 0 : i32
    %c0_i32_1 = arith.constant 0 : i32
    return %c0_i32, %c0_i32_0 : i32, i32
  }
  func.func @transform_5(%arg0: i32) -> (i32, i32) {
    %c0_i32 = arith.constant 0 : i32
    %c0_i32_0 = arith.constant 0 : i32
    %c0_i32_1 = arith.constant 0 : i32
    return %c0_i32, %c0_i32_0 : i32, i32
  }
  func.func @transform_6(%arg0: i32) -> (i32, i32) {
    %c0_i32 = arith.constant 0 : i32
    %c0_i32_0 = arith.constant 0 : i32
    %c0_i32_1 = arith.constant 0 : i32
    return %c0_i32, %c0_i32_0 : i32, i32
  }
  func.func @transform_7(%arg0: i32) -> (i32, i32) {
    %c0_i32 = arith.constant 0 : i32
    %c0_i32_0 = arith.constant 0 : i32
    %c0_i32_1 = arith.constant 0 : i32
    return %c0_i32, %c0_i32_0 : i32, i32
  }
  func.func @transform_8(%arg0: i32) -> (i32, i32) {
    %c0_i32 = arith.constant 0 : i32
    %c0_i32_0 = arith.constant 0 : i32
    %c0_i32_1 = arith.constant 0 : i32
    return %c0_i32, %c0_i32_0 : i32, i32
  }
  func.func @transform_9(%arg0: i32) -> (i32, i32) {
    %c0_i32 = arith.constant 0 : i32
    %c0_i32_0 = arith.constant 0 : i32
    %c0_i32_1 = arith.constant 0 : i32
    return %c0_i32, %c0_i32_0 : i32, i32
  }
  func.func @transform_10(%arg0: i32) -> (i32, i32, i32) {
    %c0_i32 = arith.constant 0 : i32
    %c0_i32_0 = arith.constant 0 : i32
    %c0_i32_1 = arith.constant 0 : i32
    return %arg0, %c0_i32, %c0_i32_0 : i32, i32, i32
  }
}

</mosaic_0001>

<bundles_post_ra>
// kernel: critic_forward.1
= control target key start
LH: loop header
LB: loop body
LE: loop exit
PB: predicated region body
PF: predicated region fallthrough
CT: control target
= control target key end

     0   :  { %vm46_vm0 = vcmask 130048   ;;  %vm204_vm1 = vcmask 1043456   ;;  %vm89_vm2 = vcmask 97280   ;;  %vm478_vm3 = vcmask 57344   ;;  %s995_s2 = inlined_call_operand.vmem [shape: f32[16,128], index: 2, kind: input, shape index: {}]   ;;  %s996_s0 = inlined_call_operand.vmem [shape: f32[3,8,16], index: 0, kind: input, shape index: {}]   ;;  %s997_s4 = inlined_call_operand.vmem [shape: f32[396,256], index: 4, kind: input, shape index: {}]   ;;  %s998_s3 = inlined_call_operand.vmem [shape: f32[1,128], index: 3, kind: input, shape index: {}]   ;;  %s999_s1 = inlined_call_operand.vmem [shape: f32[8,12], index: 1, kind: input, shape index: {}]   ;;  %s1000_s7 = inlined_call_operand.vmem [shape: f32[1,128], index: 7, kind: input, shape index: {}]   ;;  %s1001_s6 = inlined_call_operand.vmem [shape: f32[256,128], index: 6, kind: input, shape index: {}]   ;;  %s1002_s5 = inlined_call_operand.vmem [shape: f32[1,256], index: 5, kind: input, shape index: {}]   ;;  %s1003_s9 = inlined_call_operand.<no memory space> [shape: f32[1,1], index: 9, kind: input, shape index: {}]   ;;  %s1004_s8 = inlined_call_operand.vmem [shape: f32[1,128], index: 8, kind: input, shape index: {}]   ;;  %s1005_s10 = inlined_call_operand.vmem [shape: f32[1,1,8], index: 10, kind: output, shape index: {}]  }
   0x1   :  { %v41_v0 = vld [vmem:[%s995_s2 + $0x8] sm:$0xff]  ;;  %v40_v1 = vld [vmem:[%s995_s2] sm:$0xff]  ;;  %v125_v3 = vld [vmem:[%s997_s4 + $0xf0] sm:$0xff] }
   0x2   :  { %70 = vmatpush.msra.mxu2 %v41_v0  ;;  %v37_v2 = vld [vmem:[%s996_s0] sm:$0xff]  ;;  %211 = vmatpush.msra.mxu1 %v125_v3  ;;  %v121_v5 = vld [vmem:[%s997_s4 + $0xd0] sm:$0xff]  ;;  %v38_v14 = vld [vmem:[%s996_s0 + $0x8] sm:$0xff] }
   0x3   :  { %v123_v4 = vld [vmem:[%s997_s4 + $0xe0] sm:$0xff]  ;;  %v157_v6 = vld [vmem:[%s997_s4 + $0x1f0] sm:$0xff]  ;;  %v126_v16 = vld [vmem:[%s997_s4 + $0xf8] sm:$0xff] }
   0x4   :  { %71 = vmatpush.msra.mxu2 %v40_v1  ;;  %212 = vmatpush.msra.mxu1 %v123_v4  ;;  %v155_v7 = vld [vmem:[%s997_s4 + $0x1e0] sm:$0xff]  ;;  %v153_v9 = vld [vmem:[%s997_s4 + $0x1d0] sm:$0xff]  ;;  %v124_v18 = vld [vmem:[%s997_s4 + $0xe8] sm:$0xff] }
   0x5   :  { %484 = vmatmul.msk.f32.vlgmr.msra.gmra.mxu2 %vm46_vm0, %v37_v2  ;;  %v119_v8 = vld [vmem:[%s997_s4 + $0xc0] sm:$0xff]  ;;  %v117_v10 = vld [vmem:[%s997_s4 + $0xb0] sm:$0xff]  ;;  %v122_v21 = vld [vmem:[%s997_s4 + $0xd8] sm:$0xff] }
   0x6   :  { %231 = vmatpush.msrb.mxu2 %v157_v6  ;;  %213 = vmatpush.msra.mxu1 %v121_v5  ;;  %v193_v11 = vld [vmem:[%s997_s4 + $0x310] sm:$0xf]  ;;  %v151_v12 = vld [vmem:[%s997_s4 + $0x1c0] sm:$0xff]  ;;  %v120_v24 = vld [vmem:[%s997_s4 + $0xc8] sm:$0xff] }
   0x7   :  { %487 = vmatpush.msk.msra.mxu0 %vm204_vm1, %v193_v11  ;;  %v191_v13 = vld [vmem:[%s997_s4 + $0x300] sm:$0xff]  ;;  %v149_v17 = vld [vmem:[%s997_s4 + $0x1b0] sm:$0xff]  ;;  %v118_v27 = vld [vmem:[%s997_s4 + $0xb8] sm:$0xff] }
   0x8   :  { %232 = vmatpush.msrb.mxu2 %v155_v7  ;;  %214 = vmatpush.msra.mxu1 %v119_v8  ;;  %v115_v15 = vld [vmem:[%s997_s4 + $0xa0] sm:$0xff]  ;;  %v113_v19 = vld [vmem:[%s997_s4 + $0x90] sm:$0xff]  ;;  %v116_v32 = vld [vmem:[%s997_s4 + $0xa8] sm:$0xff] }
   0x9   :  { %286 = vmatpush.msra.mxu0 %v191_v13  ;;  %v147_v20 = vld [vmem:[%s997_s4 + $0x1a0] sm:$0xff]  ;;  %v145_v23 = vld [vmem:[%s997_s4 + $0x190] sm:$0xff]  ;;  %v114_v35 = vld [vmem:[%s997_s4 + $0x98] sm:$0xff] }
   0xa   :  { %233 = vmatpush.msrb.mxu2 %v153_v9  ;;  %215 = vmatpush.msra.mxu1 %v117_v10  ;;  %v111_v22 = vld [vmem:[%s997_s4 + $0x80] sm:$0xff]  ;;  %v109_v25 = vld [vmem:[%s997_s4 + $0x70] sm:$0xff]  ;;  %v112_v38 = vld [vmem:[%s997_s4 + $0x88] sm:$0xff] }
   0xb   :  { %291 = vmatpush.msrb.mxu0 %v126_v16  ;;  %v143_v26 = vld [vmem:[%s997_s4 + $0x180] sm:$0xff]  ;;  %v39_v28 = vld [vmem:[%s996_s0 + $0x10] sm:$0xff]  ;;  %v110_v41 = vld [vmem:[%s997_s4 + $0x78] sm:$0xff] }
   0xc   :  { %234 = vmatpush.msrb.mxu2 %v151_v12  ;;  %216 = vmatpush.msra.mxu1 %v115_v15  ;;  %v107_v29 = vld [vmem:[%s997_s4 + $0x60] sm:$0xff]  ;;  %v189_v30 = vld [vmem:[%s997_s4 + $0x2f0] sm:$0xff]  ;;  %v158_v47 = vld [vmem:[%s997_s4 + $0x1f8] sm:$0xff] }
   0xd   :  { %485 = vmatmul.msk.f32.gmra.mxu2 %vm46_vm0, %v38_v14  ;;  %292 = vmatpush.msrb.mxu0 %v124_v18  ;;  %v141_v31 = vld [vmem:[%s997_s4 + $0x170] sm:$0xff]  ;;  %v139_v34 = vld [vmem:[%s997_s4 + $0x160] sm:$0xff]  ;;  %v156_v49 = vld [vmem:[%s997_s4 + $0x1e8] sm:$0xff] }
   0xe   :  { %235 = vmatpush.msrb.mxu2 %v149_v17  ;;  %217 = vmatpush.msra.mxu1 %v113_v19  ;;  %v105_v33 = vld [vmem:[%s997_s4 + $0x50] sm:$0xff]  ;;  %v103_v36 = vld [vmem:[%s997_s4 + $0x40] sm:$0xff]  ;;  %v190_v51 = vld [vmem:[%s997_s4 + $0x2f8] sm:$0xff] }
   0xf   :  { %293 = vmatpush.msrb.mxu0 %v122_v21  ;;  %251 = vmatpush.msra.mxu3 %v189_v30  ;;  %v137_v37 = vld [vmem:[%s997_s4 + $0x150] sm:$0xff]  ;;  %v135_v40 = vld [vmem:[%s997_s4 + $0x140] sm:$0xff]  ;;  %v154_v52 = vld [vmem:[%s997_s4 + $0x1d8] sm:$0xff] }
  0x10   :  { %236 = vmatpush.msrb.mxu2 %v147_v20  ;;  %218 = vmatpush.msra.mxu1 %v111_v22  ;;  %v101_v39 = vld [vmem:[%s997_s4 + $0x30] sm:$0xff]  ;;  %v99_v42 = vld [vmem:[%s997_s4 + $0x20] sm:$0xff]  ;;  %v152_v53 = vld [vmem:[%s997_s4 + $0x1c8] sm:$0xff] }
  0x11   :  { %294 = vmatpush.msrb.mxu0 %v120_v24  ;;  %v133_v43 = vld [vmem:[%s997_s4 + $0x130] sm:$0xff]  ;;  %v131_v45 = vld [vmem:[%s997_s4 + $0x120] sm:$0xff]  ;;  %v150_v54 = vld [vmem:[%s997_s4 + $0x1b8] sm:$0xff] }
  0x12   :  { %237 = vmatpush.msrb.mxu2 %v145_v23  ;;  %219 = vmatpush.msra.mxu1 %v109_v25  ;;  %v97_v44 = vld [vmem:[%s997_s4 + $0x10] sm:$0xff]  ;;  %v95_v46 = vld [vmem:[%s997_s4] sm:$0xff]  ;;  %v108_v57 = vld [vmem:[%s997_s4 + $0x68] sm:$0xff] }
  0x13   :  { %295 = vmatpush.msrb.mxu0 %v118_v27  ;;  %v129_v48 = vld [vmem:[%s997_s4 + $0x110] sm:$0xff]  ;;  %v127_v50 = vld [vmem:[%s997_s4 + $0x100] sm:$0xff]  ;;  %v148_v58 = vld [vmem:[%s997_s4 + $0x1a8] sm:$0xff] }
  0x14   :  { %238 = vmatpush.msrb.mxu2 %v143_v26  ;;  %220 = vmatpush.msra.mxu1 %v107_v29  ;;  %v88_v55 = vld [vmem:[%s999_s1] sm:$0xff]  ;;  %v188_v59 = vld [vmem:[%s997_s4 + $0x2e8] sm:$0xff]  ;;  %v185_v60 = vld [vmem:[%s997_s4 + $0x2d0] sm:$0xff] }
  0x15   :  { %486 = vmatmul.msk.f32.gmra.mxu2 %vm46_vm0, %v39_v28  ;;  %296 = vmatpush.msrb.mxu0 %v116_v32  ;;  %90 = vst.msk [vmem:[#allocation2 + $0x18] sm:$0xff] %vm89_vm2, %v88_v55  ;;  %v187_v56 = vld [vmem:[%s997_s4 + $0x2e0] sm:$0xff]  ;;  %v106_v61 = vld [vmem:[%s997_s4 + $0x58] sm:$0xff]  ;;  %v104_v1 = vld [vmem:[%s997_s4 + $0x48] sm:$0xff] }
  0x16   :  { %239 = vmatpush.msrb.mxu2 %v141_v31  ;;  %221 = vmatpush.msra.mxu1 %v105_v33  ;;  %v146_v62 = vld [vmem:[%s997_s4 + $0x198] sm:$0xff]  ;;  %v183_v0 = vld [vmem:[%s997_s4 + $0x2c0] sm:$0xff]  ;;  %v144_v2 = vld [vmem:[%s997_s4 + $0x188] sm:$0xff] }
  0x17   :  { %297 = vmatpush.msrb.mxu0 %v114_v35  ;;  %252 = vmatpush.msra.mxu3 %v187_v56  ;;  %v186_v63 = vld [vmem:[%s997_s4 + $0x2d8] sm:$0xff]  ;;  %v184_v3 = vld [vmem:[%s997_s4 + $0x2c8] sm:$0xff]  ;;  %v181_v5 = vld [vmem:[%s997_s4 + $0x2b0] sm:$0xff] }
  0x18   :  { %240 = vmatpush.msrb.mxu2 %v139_v34  ;;  %222 = vmatpush.msra.mxu1 %v103_v36  ;;  %v102_v6 = vld [vmem:[%s997_s4 + $0x38] sm:$0xff]  ;;  %v179_v9 = vld [vmem:[%s997_s4 + $0x2a0] sm:$0xff]  ;;  %v100_v10 = vld [vmem:[%s997_s4 + $0x28] sm:$0xff] }
  0x19   :  { %298 = vmatpush.msrb.mxu0 %v112_v38  ;;  %253 = vmatpush.msra.mxu3 %v185_v60  ;;  %v142_v7 = vld [vmem:[%s997_s4 + $0x178] sm:$0xff]  ;;  %v140_v11 = vld [vmem:[%s997_s4 + $0x168] sm:$0xff]  ;;  %v177_v13 = vld [vmem:[%s997_s4 + $0x290] sm:$0xff] }
  0x1a   :  { %241 = vmatpush.msrb.mxu2 %v137_v37  ;;  %223 = vmatpush.msra.mxu1 %v101_v39  ;;  %v182_v8 = vld [vmem:[%s997_s4 + $0x2b8] sm:$0xff]  ;;  %v180_v12 = vld [vmem:[%s997_s4 + $0x2a8] sm:$0xff]  ;;  %v175_v17 = vld [vmem:[%s997_s4 + $0x280] sm:$0xff] }
  0x1b   :  { %299 = vmatpush.msrb.mxu0 %v110_v41  ;;  %254 = vmatpush.msra.mxu3 %v183_v0  ;;  %v98_v14 = vld [vmem:[%s997_s4 + $0x18] sm:$0xff]  ;;  %v96_v18 = vld [vmem:[%s997_s4 + $0x8] sm:$0xff]  ;;  %v173_v21 = vld [vmem:[%s997_s4 + $0x270] sm:$0xff] }
  0x1c   :  { %242 = vmatpush.msrb.mxu2 %v135_v40  ;;  %224 = vmatpush.msra.mxu1 %v99_v42  ;;  %v760_v4 = vld [vmem:[#allocation2 + $0x18] sm:$0xff]  ;;  %v136_v19 = vld [vmem:[%s997_s4 + $0x148] sm:$0xff]  ;;  %v171_v24 = vld [vmem:[%s997_s4 + $0x260] sm:$0xff] }
  0x1d   :  { %300 = vmatpush.msrb.mxu0 %v108_v57  ;;  %255 = vmatpush.msra.mxu3 %v181_v5  ;;  %v138_v15 = vld [vmem:[%s997_s4 + $0x158] sm:$0xff]  ;;  %v176_v20 = vld [vmem:[%s997_s4 + $0x288] sm:$0xff]  ;;  %v169_v27 = vld [vmem:[%s997_s4 + $0x250] sm:$0xff] }
  0x1e   :  { %243 = vmatpush.msrb.mxu2 %v133_v43  ;;  %225 = vmatpush.msra.mxu1 %v97_v44  ;;  %v178_v16 = vld [vmem:[%s997_s4 + $0x298] sm:$0xff]  ;;  %v132_v25 = vld [vmem:[%s997_s4 + $0x128] sm:$0xff]  ;;  %v167_v30 = vld [vmem:[%s997_s4 + $0x240] sm:$0xff] }
  0x1f   :  { %301 = vmatpush.msrb.mxu0 %v106_v61  ;;  %256 = vmatpush.msra.mxu3 %v179_v9  ;;  %v134_v22 = vld [vmem:[%s997_s4 + $0x138] sm:$0xff]  ;;  %v172_v26 = vld [vmem:[%s997_s4 + $0x268] sm:$0xff]  ;;  %v165_v33 = vld [vmem:[%s997_s4 + $0x230] sm:$0xff] }
  0x20   :  { %244 = vmatpush.msrb.mxu2 %v131_v45  ;;  %226 = vmatpush.msra.mxu1 %v95_v46  ;;  %v174_v23 = vld [vmem:[%s997_s4 + $0x278] sm:$0xff]  ;;  %v128_v31 = vld [vmem:[%s997_s4 + $0x108] sm:$0xff]  ;;  %v163_v35 = vld [vmem:[%s997_s4 + $0x220] sm:$0xff] }
  0x21   :  { %302 = vmatpush.msrb.mxu0 %v104_v1  ;;  %257 = vmatpush.msra.mxu3 %v177_v13  ;;  %v130_v28 = vld [vmem:[%s997_s4 + $0x118] sm:$0xff]  ;;  %v168_v32 = vld [vmem:[%s997_s4 + $0x248] sm:$0xff]  ;;  %v161_v37 = vld [vmem:[%s997_s4 + $0x210] sm:$0xff] }
  0x22   :  { %311 = vmatpush.msrb.mxu1 %v158_v47  ;;  %245 = vmatpush.msrb.mxu2 %v129_v48  ;;  %v170_v29 = vld [vmem:[%s997_s4 + $0x258] sm:$0xff]  ;;  %v164_v36 = vld [vmem:[%s997_s4 + $0x228] sm:$0xff]  ;;  %v159_v39 = vld [vmem:[%s997_s4 + $0x200] sm:$0xff] }
  0x23   :  { %488 = vmatmul.msk.f32.vlgmr.msra.gmra.mxu0 %vm89_vm2, %v760_v4  ;;  %258 = vmatpush.msra.mxu3 %v175_v17  ;;  %v166_v34 = vld [vmem:[%s997_s4 + $0x238] sm:$0xff]  ;;  %v160_v40 = vld [vmem:[%s997_s4 + $0x208] sm:$0xff]  ;;  %v493_v43 = vld [vmem:[%s998_s3] ss:$0 sm:$0xff] }
  0x24   :  { %312 = vmatpush.msrb.mxu1 %v156_v49  ;;  %246 = vmatpush.msrb.mxu2 %v127_v50  ;;  %v162_v38 = vld [vmem:[%s997_s4 + $0x218] sm:$0xff]  ;;  %v192_v42 = vld [vmem:[%s997_s4 + $0x308] sm:$0xff]  ;;  %v385_v56 = vld [vmem:[%s1001_s6 + $0x60] sm:$0xff] }
  0x25   :  { %303 = vmatpush.msrb.mxu0 %v102_v6  ;;  %259 = vmatpush.msra.mxu3 %v173_v21  ;;  %v194_v41 = vld [vmem:[%s997_s4 + $0x318] sm:$0xf]  ;;  %v386_v55 = vld [vmem:[%s1001_s6 + $0x68] sm:$0xff]  ;;  %v383_v60 = vld [vmem:[%s1001_s6 + $0x50] sm:$0xff] }
  0x26   :  { %331 = vmatpush.msra.mxu2 %v190_v51  ;;  %313 = vmatpush.msrb.mxu1 %v154_v52  ;;  %v404_v57 = vld [vmem:[%s1001_s6 + $0xf8] sm:$0xff]  ;;  %v402_v61 = vld [vmem:[%s1001_s6 + $0xe8] sm:$0xff]  ;;  %v381_v0 = vld [vmem:[%s1001_s6 + $0x40] sm:$0xff] }
  0x27   :  { %304 = vmatpush.msrb.mxu0 %v100_v10  ;;  %260 = vmatpush.msra.mxu3 %v171_v24  ;;  %v400_v1 = vld [vmem:[%s1001_s6 + $0xd8] sm:$0xff]  ;;  %v398_v5 = vld [vmem:[%s1001_s6 + $0xc8] sm:$0xff] }
  0x28   :  { %314 = vmatpush.msrb.mxu1 %v152_v53  ;;  %332 = vmatpush.msra.mxu2 %v188_v59  ;;  %v388_v53 = vld [vmem:[%s1001_s6 + $0x78] sm:$0xff]  ;;  %v378_v6 = vld [vmem:[%s1001_s6 + $0x28] sm:$0xff] }
  0x29   :  { %305 = vmatpush.msrb.mxu0 %v98_v14  ;;  %261 = vmatpush.msra.mxu3 %v169_v27  ;;  %v384_v59 = vld [vmem:[%s1001_s6 + $0x58] sm:$0xff]  ;;  %v394_v13 = vld [vmem:[%s1001_s6 + $0xa8] sm:$0xff] }
  0x2a   :  { %315 = vmatpush.msrb.mxu1 %v150_v54  ;;  %333 = vmatpush.msra.mxu2 %v186_v63  ;;  %v387_v54 = vld [vmem:[%s1001_s6 + $0x70] sm:$0xff]  ;;  %v401_v63 = vld [vmem:[%s1001_s6 + $0xe0] sm:$0xff]  ;;  %v396_v9 = vld [vmem:[%s1001_s6 + $0xb8] sm:$0xff] }
  0x2b   :  { %306 = vmatpush.msrb.mxu0 %v96_v18  ;;  %262 = vmatpush.msra.mxu3 %v167_v30  ;;  %v376_v10 = vld [vmem:[%s1001_s6 + $0x18] sm:$0xff]  ;;  %v374_v14 = vld [vmem:[%s1001_s6 + $0x8] sm:$0xff]  ;;  %v391_v18 = vld [vmem:[%s1001_s6 + $0x90] sm:$0xff] }
  0x2c   :  { %316 = vmatpush.msrb.mxu1 %v148_v58  ;;  %334 = vmatpush.msra.mxu2 %v184_v3  ;;  %v403_v58 = vld [vmem:[%s1001_s6 + $0xf0] sm:$0xff]  ;;  %v392_v17 = vld [vmem:[%s1001_s6 + $0x98] sm:$0xff] }
  0x2d   :  { %263 = vmatpush.msra.mxu3 %v165_v33  ;;  %429 = vmatpush.msra.mxu0 %v404_v57  ;;  %v399_v3 = vld [vmem:[%s1001_s6 + $0xd0] sm:$0xff] }
  0x2e   :  { %317 = vmatpush.msrb.mxu1 %v146_v62  ;;  %335 = vmatpush.msra.mxu2 %v182_v8  ;;  %v382_v62 = vld [vmem:[%s1001_s6 + $0x48] sm:$0xff]  ;;  %v377_v8 = vld [vmem:[%s1001_s6 + $0x20] sm:$0xff] }
  0x2f   :  { %264 = vmatpush.msra.mxu3 %v163_v35  ;;  %430 = vmatpush.msra.mxu0 %v403_v58 }
  0x30   :  { %318 = vmatpush.msrb.mxu1 %v144_v2  ;;  %336 = vmatpush.msra.mxu2 %v180_v12  ;;  %v380_v2 = vld [vmem:[%s1001_s6 + $0x38] sm:$0xff]  ;;  %v375_v12 = vld [vmem:[%s1001_s6 + $0x10] sm:$0xff] }
  0x31   :  { %265 = vmatpush.msra.mxu3 %v161_v37  ;;  %431 = vmatpush.msra.mxu0 %v402_v61 }
  0x32   :  { %319 = vmatpush.msrb.mxu1 %v142_v7  ;;  %337 = vmatpush.msra.mxu2 %v178_v16  ;;  %v397_v7 = vld [vmem:[%s1001_s6 + $0xc0] sm:$0xff] }
  0x33   :  { %266 = vmatpush.msra.mxu3 %v159_v39  ;;  %432 = vmatpush.msra.mxu0 %v401_v63  ;;  %v373_v16 = vld [vmem:[%s1001_s6] sm:$0xff] }
  0x34   :  { %320 = vmatpush.msrb.mxu1 %v140_v11  ;;  %338 = vmatpush.msra.mxu2 %v176_v20  ;;  %v395_v11 = vld [vmem:[%s1001_s6 + $0xb0] sm:$0xff]  ;;  %v389_v20 = vld [vmem:[%s1001_s6 + $0x80] sm:$0xff] }
  0x35   :  { %489 = vmatpush.msk.msrb.mxu3 %vm204_vm1, %v194_v41  ;;  %433 = vmatpush.msra.mxu0 %v400_v1 }
  0x36   :  { %321 = vmatpush.msrb.mxu1 %v138_v15  ;;  %339 = vmatpush.msra.mxu2 %v174_v23  ;;  %v393_v15 = vld [vmem:[%s1001_s6 + $0xa0] sm:$0xff] }
  0x37   :  { %366 = vmatpush.msrb.mxu3 %v192_v42  ;;  %434 = vmatpush.msra.mxu0 %v399_v3  ;;  %v15_v42 = vstv %s1003_s9 }
  0x38   :  { %322 = vmatpush.msrb.mxu1 %v136_v19  ;;  %340 = vmatpush.msra.mxu2 %v172_v26  ;;  %v390_v19 = vld [vmem:[%s1001_s6 + $0x88] sm:$0xff]  ;;  %16 = vst [vmem:[#allocation3] sm:$0x1] %v15_v42 }
  0x39   :  { %435 = vmatpush.msra.mxu0 %v398_v5 }
  0x3a   :  { %323 = vmatpush.msrb.mxu1 %v134_v22  ;;  %341 = vmatpush.msra.mxu2 %v170_v29  ;;  %v195_v22 = vld [vmem:[%s1002_s5] sm:$0x3] }
  0x3b   :  { %436 = vmatpush.msra.mxu0 %v397_v7  ;;  %v197_v24 = vperm.slane %v195_v22, 0  ;;  %v198_v27 = vperm.slane %v195_v22, 1 }
  0x3c   :  { %324 = vmatpush.msrb.mxu1 %v132_v25  ;;  %342 = vmatpush.msra.mxu2 %v168_v32 }
  0x3d   :  { %437 = vmatpush.msra.mxu0 %v396_v9 }
  0x3e   :  { %325 = vmatpush.msrb.mxu1 %v130_v28  ;;  %343 = vmatpush.msra.mxu2 %v166_v34 }
  0x3f   :  { %438 = vmatpush.msra.mxu0 %v395_v11 }
  0x40   :  { %326 = vmatpush.msrb.mxu1 %v128_v31  ;;  %344 = vmatpush.msra.mxu2 %v164_v36 }
  0x41   :  { %439 = vmatpush.msra.mxu0 %v394_v13 }
  0x42   :  { %345 = vmatpush.msra.mxu2 %v162_v38 }
  0x43   :  { %440 = vmatpush.msra.mxu0 %v393_v15 }
  0x44   :  { %346 = vmatpush.msra.mxu2 %v160_v40 }
  0x45   :  { %441 = vmatpush.msra.mxu0 %v392_v17 }
  0x47   :  { %442 = vmatpush.msra.mxu0 %v391_v18 }
  0x49   :  { %443 = vmatpush.msra.mxu0 %v390_v19 }
  0x4b   :  { %444 = vmatpush.msra.mxu0 %v389_v20 }
  0x88   :  { %v73_v44 = vpop.f32.mrf.mxu2 }
  0x89   :  { %v74_v45 = vadd.f32 %v493_v43, %v73_v44  ;;  %v451_v44 = vld [vmem:[#allocation3] sm:$0x1] }
  0x8b   :  { %v82_v46 = vmax.f32 %v74_v45, 0.0  ;;  %v494_v45 = vld [vmem:[%s1000_s7] ss:$0 sm:$0xff] }
  0x8d   :  { %227 = vmatmul.f32.vlgmr.msra.gmra.mxu1 %v82_v46  ;;  %307 = vmatmul.f32.vlgmr.msrb.gmra.mxu0 %v82_v46 }
  0x90   :  { %v76_v47 = vpop.f32.mrf.mxu2 }
  0x91   :  { %v77_v48 = vadd.f32 %v493_v43, %v76_v47 }
  0x93   :  { %v83_v49 = vmax.f32 %v77_v48, 0.0 }
  0x95   :  { %247 = vmatmul.f32.vlgmr.msrb.gmra.mxu2 %v83_v49  ;;  %327 = vmatmul.f32.vlgmr.msrb.gmra.mxu1 %v83_v49 }
  0x98   :  { %v79_v50 = vpop.f32.mrf.mxu2 }
  0x99   :  { %v80_v51 = vadd.f32 %v493_v43, %v79_v50  ;;  %v495_v43 = vmov 0  }
  0x9a   :  { %492 = vset.pattern.permute.xlu0 %v495_v43 }
  0x9b   :  { %v84_v52 = vmax.f32 %v80_v51, 0.0  ;;  %454 = vperm.xlu0 %492, %v451_v44   ;;  %v450_v51 = vld [vmem:[%s1004_s8] sm:$0x1] }
  0x9d   :  { %267 = vmatmul.f32.vlgmr.msra.gmra.mxu3 %v84_v52  ;;  %347 = vmatmul.f32.vlgmr.msra.gmra.mxu2 %v84_v52 }
  0x9e   :  { %409 = vmatpush.msra.mxu3 %v388_v53 }
  0xa0   :  { %410 = vmatpush.msra.mxu3 %v387_v54  ;;  %v288_v21 = vpop.f32.mrf.mxu0 }
  0xa2   :  { %411 = vmatpush.msra.mxu3 %v386_v55 }
  0xa4   :  { %412 = vmatpush.msra.mxu3 %v385_v56 }
  0xa5   :  { %490 = vmatmul.msk.f32.vlgmr.msrb.gmra.mxu3 %vm89_vm2, %v760_v4  ;;  %v379_v4 = vld [vmem:[%s1001_s6 + $0x30] sm:$0xff] }
  0xa6   :  { %413 = vmatpush.msra.mxu3 %v384_v59 }
  0xa8   :  { %414 = vmatpush.msra.mxu3 %v383_v60 }
  0xaa   :  { %415 = vmatpush.msra.mxu3 %v382_v62 }
  0xac   :  { %416 = vmatpush.msra.mxu3 %v381_v0 }
  0xae   :  { %417 = vmatpush.msra.mxu3 %v380_v2 }
  0xb0   :  { %418 = vmatpush.msra.mxu3 %v379_v4 }
  0xb2   :  { %419 = vmatpush.msra.mxu3 %v378_v6 }
  0xb4   :  { %420 = vmatpush.msra.mxu3 %v377_v8 }
  0xb6   :  { %421 = vmatpush.msra.mxu3 %v376_v10 }
  0xb8   :  { %422 = vmatpush.msra.mxu3 %v375_v12 }
  0xba   :  { %423 = vmatpush.msra.mxu3 %v374_v14 }
  0xbc   :  { %424 = vmatpush.msra.mxu3 %v373_v16 }
 0x10a   :  { %v228_v23 = vpop.f32.mrf.mxu1  ;;  %v308_v29 = vpop.f32.mrf.mxu0 }
 0x10b   :  { %v229_v26 = vadd.f32 %v228_v23, %v197_v24  ;;  %v309_v33 = vadd.f32 %v308_v29, %v198_v27 }
 0x10d   :  { %v455_v52 = vpop.permute.xlu0 %454 }
 0x10e   :  { %v457_v53 = vperm.slane %v455_v52, 0 }
 0x112   :  { %v328_v32 = vpop.f32.mrf.mxu1 }
 0x113   :  { %v329_v36 = vadd.f32 %v328_v32, %v309_v33 }
 0x118   :  { %v248_v25 = vpop.f32.mrf.mxu2 }
 0x119   :  { %v249_v28 = vadd.f32 %v248_v25, %v229_v26 }
 0x120   :  { %v268_v30 = vpop.f32.mrf.mxu3  ;;  %v348_v35 = vpop.f32.mrf.mxu2 }
 0x121   :  { %v269_v31 = vadd.f32 %v268_v30, %v249_v28  ;;  %v349_v38 = vadd.f32 %v348_v35, %v329_v36 }
 0x123   :  { %v289_v34 = vadd.f32 %v288_v21, %v269_v31 }
 0x125   :  { %v371_v37 = vmax.f32 %v289_v34, 0.0 }
 0x127   :  { %425 = vmatmul.f32.vlgmr.msra.gmra.mxu3 %v371_v37 }
 0x128   :  { %v368_v39 = vpop.f32.mrf.mxu3 }
 0x129   :  { %v369_v40 = vadd.f32 %v368_v39, %v349_v38 }
 0x12b   :  { %v372_v41 = vmax.f32 %v369_v40, 0.0 }
 0x12d   :  { %445 = vmatmul.f32.vlgmr.msra.gmra.mxu0 %v372_v41 }
 0x1aa   :  { %v426_v46 = vpop.f32.mrf.mxu3  ;;  %v446_v48 = vpop.f32.mrf.mxu0 }
 0x1ab   :  { %v427_v47 = vadd.f32 %v494_v45, %v426_v46 }
 0x1ad   :  { %v447_v49 = vadd.f32 %v446_v48, %v427_v47 }
 0x1af   :  { %v449_v50 = vmax.f32 %v447_v49, 0.0 }
 0x1b1   :  { %473 = vmatpush.xpose.msra.mxu1 %v449_v50 }
 0x1b4   :  { %474 = vmatmul.f32.vlgmr.msra.gmra.mxu1 %v450_v51 }
 0x231   :  { %v475_v54 = vpop.f32.mrf.mxu1 }
 0x232   :  { %v476_v55 = vadd.f32 %v475_v54, %v457_v53 }
 0x234   :  { %479 = vst.msk [vmem:[%s1005_s10] sm:$0x1] %vm478_vm3, %v476_v55 }

</bundles_post_ra>
